<compile_context>
chip_gen: v7x
topology: tpu7x:2x2x1
jax: 0.10.0
libtpu: 0.0.40
codegen_flags: <defaults>
</compile_context>

<pallas_src>
import functools

import jax
import jax.numpy as jnp
from jax import lax
from jax.experimental import pallas as pl
from jax.experimental.pallas import tpu as pltpu

BN_EPS = 1e-5


def _vmem_capacity_bytes():
    """Physical VMEM of the local TPU (fallback: assume v7x's 64 MiB)."""
    try:
        return int(pltpu.get_tpu_info().vmem_capacity_bytes)
    except Exception:
        return 64 << 20


# ----------------------------------------------------------------------------
# Pallas kernel 1: pairwise squared distances (used by knn_point)
# ----------------------------------------------------------------------------
def _sqdist_kernel(c_ref, p_ref, o_ref):
    # caug = [-2c, |c|^2, 1, 0...], paug = [p, 1, |p|^2, 0...] (8 lanes each), so
    # contracting the last axis yields |c|^2 + |p|^2 - 2 c.p directly on the MXU
    # (no in-kernel transpose, no broadcast adds).
    o_ref[...] = lax.dot_general(
        c_ref[...], p_ref[...],
        dimension_numbers=(((2,), (2,)), ((0,), (0,))),
        preferred_element_type=jnp.float32)


def pairwise_sqdist(centers, points):
    """centers: (B, G, 3), points: (B, N, 3) -> (B, G, N) squared distances."""
    B, G, _ = centers.shape
    N = points.shape[1]
    c = centers.astype(jnp.float32)
    p = points.astype(jnp.float32)
    cn = jnp.sum(c * c, axis=-1, keepdims=True)                       # (B, G, 1)
    pn = jnp.sum(p * p, axis=-1, keepdims=True)                       # (B, N, 1)
    caug = jnp.concatenate(
        [-2.0 * c, cn, jnp.ones((B, G, 1), jnp.float32),
         jnp.zeros((B, G, 3), jnp.float32)], axis=-1)                 # (B, G, 8)
    paug = jnp.concatenate(
        [p, jnp.ones((B, N, 1), jnp.float32), pn,
         jnp.zeros((B, N, 3), jnp.float32)], axis=-1)                 # (B, N, 8)

    # Grid over B ("parallel" -> both v7x TCs) with lane-dense N tiles when N is
    # a multiple of 128 (unmasked vst); otherwise the full extent (toy sizes).
    # Cancellation may give tiny negative distances; harmless for top-k ordering.
    if N % 128 == 0:
        tile_n = 128
        for cand in (2048, 1024, 512, 256, 128):
            if N % cand == 0:
                tile_n = cand
                break
    else:
        tile_n = N
    grid = (B, N // tile_n)
    return pl.pallas_call(
        _sqdist_kernel,
        grid=grid,
        in_specs=[pl.BlockSpec((1, G, 8), lambda b, j: (b, 0, 0)),
                  pl.BlockSpec((1, tile_n, 8), lambda b, j: (b, j, 0))],
        out_specs=pl.BlockSpec((1, G, tile_n), lambda b, j: (b, 0, j)),
        out_shape=jax.ShapeDtypeStruct((B, G, N), jnp.float32),
        compiler_params=pltpu.CompilerParams(
            dimension_semantics=("parallel", "arbitrary")),
        cost_estimate=pl.CostEstimate(
            flops=2 * B * G * N * 8, transcendentals=0,
            bytes_accessed=4 * (B * G * 8 + B * N * 8 + B * G * N)),
    )(caug, paug)


# ----------------------------------------------------------------------------
# Pallas kernels 2-3: the Encoder as two streamed stages.
#   Stage A: conv1+BN1+ReLU (BN1 pre-folded into w1/b1) -> conv2 -> max_K ->
#            split conv3 (local half algebraically fused), emitting bf16 h2 and
#            exact per-tile BN2 (mean, M2) statistics from the f32 values.
#   Stage B: reduced BN2 affine + ReLU -> conv4 -> max_K.
# ----------------------------------------------------------------------------
def _stage_a_kernel(pts_ref, w1_ref, b1_ref, w2_ref, b2_ref, w23_ref, b23_ref,
                    w3g_ref, b3_ref, h2_ref, m_ref, v_ref, *, tile_bg, k):
    # conv1 + (pre-folded) BN1 + ReLU on a (rows, 8) points-as-rows tile.
    h = jnp.maximum(
        jnp.dot(pts_ref[...], w1_ref[...],
                preferred_element_type=jnp.float32) + b1_ref[...], 0.0)
    h_bf = h.astype(jnp.bfloat16)                                         # cast once
    # conv2 output is only needed for the max-over-K / global path; the per-point
    # ("local") half of conv3 is fused: loc = h @ (w2 @ w3_local) + b2 @ w3_local.
    feat = jnp.dot(h_bf, w2_ref[...],
                   preferred_element_type=jnp.float32) + b2_ref[...]      # (R, 256)
    cmid = feat.shape[-1]
    fglob = jnp.max(feat.reshape(tile_bg, k, cmid), axis=1)               # (bg_t, 256)
    glb = jnp.dot(fglob.astype(jnp.bfloat16), w3g_ref[...],
                  preferred_element_type=jnp.float32) + b3_ref[...]       # (bg_t, 512)
    loc = jnp.dot(h_bf, w23_ref[...],
                  preferred_element_type=jnp.float32) + b23_ref[...]      # (R, 512)
    chid = loc.shape[-1]
    h2 = (loc.reshape(tile_bg, k, chid)
          + glb.reshape(tile_bg, 1, chid)).reshape(tile_bg * k, chid)     # f32
    h2_ref[...] = h2.astype(jnp.bfloat16)                                 # bf16 to HBM
    # Exact BN2 partials from the pre-cast f32 values: tile mean + tile M2
    # (sum of squared deviations); Chan-combined outside (numerically stable).
    mean_t = jnp.mean(h2, axis=0, keepdims=True)
    m_ref[...] = mean_t[None]
    v_ref[...] = jnp.sum((h2 - mean_t) ** 2, axis=0, keepdims=True)[None]


def _stage_b_kernel(h2_ref, sc2_ref, sh2_ref, w4_ref, b4_ref, out_ref,
                    *, tile_bg, k):
    # BN2 (folded affine, applied to bf16-rounded h2) -> ReLU -> conv4 -> max_K.
    h = jnp.maximum(
        h2_ref[...].astype(jnp.float32) * sc2_ref[...] + sh2_ref[...], 0.0)
    f2 = jnp.dot(h.astype(jnp.bfloat16), w4_ref[...],
                 preferred_element_type=jnp.float32) + b4_ref[...]        # (R, C)
    out_ref[...] = jnp.max(f2.reshape(tile_bg, k, f2.shape[-1]), axis=1)  # (bg_t, C)


def _bn2_affine(tile_means, tile_m2s, tile_rows, total_rows, gamma, beta):
    """Chan-combine equal-count per-tile (mean, M2) -> fold full-batch BN2 into
    a per-channel affine (biased variance, as nn.BatchNorm1d in training)."""
    mu = jnp.mean(tile_means, axis=0)                                     # (1, C)
    m2 = (jnp.sum(tile_m2s, axis=0)
          + tile_rows * jnp.sum((tile_means - mu[None]) ** 2, axis=0))    # (1, C)
    var = m2 / total_rows
    scale = gamma * lax.rsqrt(var + BN_EPS)
    shift = beta - mu * scale
    return scale, shift


def _bn1_fold(pts, w1, b1, gamma, beta, rows):
    """Exact full-batch BN1 statistics computed analytically (BN1 sees an affine
    map of the points), folded into conv1's weight/bias."""
    mu_p = jnp.mean(pts, axis=0, keepdims=True)                           # (1, 8)
    d = pts - mu_p
    cov_p = (d.T @ d) / rows                                              # (8, 8)
    mu1 = mu_p @ w1 + b1                                                  # (1, C1)
    var1 = jnp.sum((cov_p @ w1) * w1, axis=0, keepdims=True)              # (1, C1)
    scale1 = gamma * lax.rsqrt(var1 + BN_EPS)
    shift1 = beta - mu1 * scale1
    return w1 * scale1, b1 * scale1 + shift1


def _pick_tile_bg(bg, k, target_rows):
    # Prefer >= 2 grid tiles so both v7x TensorCores get work.  Non-full tiles
    # need tile_bg % 8 == 0 (stage-B output block) and (tile_bg*k) % 16 == 0
    # (bf16 h2 row blocks); tile_bg must divide bg.
    target_bg = max(1, target_rows // max(k, 1))
    upper = min(bg // 2, target_bg) if bg >= 2 else bg
    for cand in range(upper, 0, -1):
        if bg % cand == 0 and cand % 8 == 0 and (cand * k) % 16 == 0:
            return cand
    return bg  # single full-extent tile (tiny problems)


def encoder_forward(neighborhood, params, *, tile_bg=None):
    """neighborhood: (B, G, K, 3) -> features (B, G, encoder_channel)."""
    B, G, K, _ = neighborhood.shape
    bg = B * G
    rows = bg * K
    pin = params["w1"].shape[0]        # 8  (coord dim padded to 8)
    c1 = params["w1"].shape[1]         # 128
    c2 = params["w2"].shape[1]         # 256
    c3 = params["w3"].shape[1]         # 512
    enc_c = params["w4"].shape[1]

    # Per-generation VMEM budget: bigger streamed tiles + higher scoped limit on
    # the 128 MiB chips (v5e/v6e); conservative on v7x's 64 MiB (never >= physical).
    vmem_cap = _vmem_capacity_bytes()
    vmem_limit = min(64 << 20, max(32 << 20, vmem_cap - (24 << 20)))
    target_rows = 4096 if vmem_cap >= (100 << 20) else 2048

    if tile_bg is None:
        tile_bg = _pick_tile_bg(bg, K, target_rows)
    assert bg % tile_bg == 0
    n_tiles = bg // tile_bg
    tr = tile_bg * K
    assert n_tiles == 1 or (tile_bg % 8 == 0 and tr % 16 == 0)

    pts = neighborhood.reshape(rows, 3).astype(jnp.float32)
    pts = jnp.pad(pts, ((0, 0), (0, pin - 3)))             # zero-pad coord dim 3 -> 8

    # BN1 folded into conv1 (exact analytic full-batch statistics).
    w1f, b1f = _bn1_fold(pts, params["w1"], params["b1"],
                         params["g1"], params["be1"], jnp.float32(rows))

    # w3 split: rows :c2 act on the broadcast global feature, c2: on the local
    # per-point feature.  The local half fuses with conv2 (no nonlinearity in
    # between): loc = h @ (w2 @ w3_local) + b2 @ w3_local.
    w3g = params["w3"][:c2, :]
    w3l = params["w3"][c2:, :]
    w23 = params["w2"] @ w3l                               # (c1, c3) f32
    b23 = params["b2"] @ w3l                               # (1, c3)  f32

    # bf16 operands for the wide MXU matmuls (f32 accumulation inside kernels).
    w2_bf = params["w2"].astype(jnp.bfloat16)
    w23_bf = w23.astype(jnp.bfloat16)
    w3g_bf = w3g.astype(jnp.bfloat16)
    w4_bf = params["w4"].astype(jnp.bfloat16)

    par = pltpu.CompilerParams(dimension_semantics=("parallel",),
                               vmem_limit_bytes=vmem_limit)
    res = lambda i: (0, 0)                                 # resident weights / params
    row = lambda i: (i, 0)                                 # streamed row tiles
    st = lambda i: (i, 0, 0)                               # per-tile stat partials

    # ---- stage A: conv1+BN1+ReLU -> conv2 -> max_K -> split conv3 (+BN2 stats)
    h2, m2t, v2t = pl.pallas_call(
        functools.partial(_stage_a_kernel, tile_bg=tile_bg, k=K),
        grid=(n_tiles,),
        in_specs=[pl.BlockSpec((tr, pin), row),
                  pl.BlockSpec((pin, c1), res), pl.BlockSpec((1, c1), res),
                  pl.BlockSpec((c1, c2), res), pl.BlockSpec((1, c2), res),
                  pl.BlockSpec((c1, c3), res), pl.BlockSpec((1, c3), res),
                  pl.BlockSpec((c2, c3), res), pl.BlockSpec((1, c3), res)],
        out_specs=[pl.BlockSpec((tr, c3), row),
                   pl.BlockSpec((1, 1, c3), st),
                   pl.BlockSpec((1, 1, c3), st)],
        out_shape=[jax.ShapeDtypeStruct((rows, c3), jnp.bfloat16),
                   jax.ShapeDtypeStruct((n_tiles, 1, c3), jnp.float32),
                   jax.ShapeDtypeStruct((n_tiles, 1, c3), jnp.float32)],
        compiler_params=par,
        cost_estimate=pl.CostEstimate(
            flops=2 * (rows * pin * c1 + rows * c1 * c2 + rows * c1 * c3
                       + bg * c2 * c3),
            transcendentals=0,
            bytes_accessed=(4 * rows * pin + 2 * rows * c3
                            + 2 * (c1 * c2 + c1 * c3 + c2 * c3))),
    )(pts, w1f, b1f, w2_bf, params["b2"], w23_bf, b23, w3g_bf, params["b3"])

    scale2, shift2 = _bn2_affine(m2t, v2t, jnp.float32(tr), jnp.float32(rows),
                                 params["g2"], params["be2"])

    # ---- stage B: BN2+ReLU -> conv4 -> max_K ---------------------------------
    out = pl.pallas_call(
        functools.partial(_stage_b_kernel, tile_bg=tile_bg, k=K),
        grid=(n_tiles,),
        in_specs=[pl.BlockSpec((tr, c3), row),
                  pl.BlockSpec((1, c3), res), pl.BlockSpec((1, c3), res),
                  pl.BlockSpec((c3, enc_c), res), pl.BlockSpec((1, enc_c), res)],
        out_specs=pl.BlockSpec((tile_bg, enc_c), row),
        out_shape=jax.ShapeDtypeStruct((bg, enc_c), jnp.float32),
        compiler_params=par,
        cost_estimate=pl.CostEstimate(
            flops=2 * rows * c3 * enc_c, transcendentals=0,
            bytes_accessed=2 * rows * c3 + 4 * bg * enc_c + 2 * c3 * enc_c),
    )(h2, scale2, shift2, w4_bf, params["b4"])

    return out.reshape(B, G, enc_c)


# ----------------------------------------------------------------------------
# Plain-JAX glue: FPS, KNN selection, gathers
# ----------------------------------------------------------------------------
def furthest_point_sample(xyz, n_samples):
    """xyz: (B, N, 3) -> (B, n_samples) int32 indices (pointnet2 semantics)."""
    # TODO(synk): sequential data-dependent argmax chain; kept as plain-JAX glue.
    B, N, _ = xyz.shape

    def body(i, state):
        idxs, min_d, farthest = state
        idxs = idxs.at[:, i].set(farthest)
        centroid = xyz[jnp.arange(B), farthest][:, None, :]       # (B, 1, 3)
        d = jnp.sum((xyz - centroid) ** 2, axis=-1)               # (B, N)
        min_d = jnp.minimum(min_d, d)
        farthest = jnp.argmax(min_d, axis=-1).astype(jnp.int32)
        return idxs, min_d, farthest

    idxs0 = jnp.zeros((B, n_samples), jnp.int32)
    mind0 = jnp.full((B, N), 1e10, jnp.float32)
    far0 = jnp.zeros((B,), jnp.int32)
    idxs, _, _ = lax.fori_loop(0, n_samples, body, (idxs0, mind0, far0))
    return idxs


def simple_encoder_forward(xyz, n_group, group_size, params, *, tile_bg=None):
    """xyz: (B, N, 7) -> (center, features, normal, plane_idx)."""
    if isinstance(n_group, list):
        n_group = n_group[-1]
    B, N, c7 = xyz.shape
    assert c7 == 7
    coor = xyz[:, :, :3]

    # fps + gather_operation -> (B, 7, n_group)
    fps_idx = furthest_point_sample(coor, n_group)
    gather_idx = jnp.broadcast_to(fps_idx[:, :, None], (B, n_group, 7))
    sampled = jnp.take_along_axis(xyz, gather_idx, axis=1)        # (B, n_group, 7)
    fps_data = jnp.transpose(sampled, (0, 2, 1))                  # (B, 7, n_group)

    center = fps_data[:, :3, :]                                   # (B, 3, n_group)
    normal = fps_data[:, 3:6, :]                                  # (B, 3, n_group)
    plane_idx = fps_data[:, -1:, :]                               # (B, 1, n_group)

    center_pts = sampled[:, :, :3]                                # (B, n_group, 3)
    dist = pairwise_sqdist(center_pts, coor)                      # (B, n_group, N)  [Pallas]
    # TODO(synk): top-k selection has no clean Pallas equivalent; done with lax.top_k.
    _, idx = lax.top_k(-dist, group_size)                         # (B, n_group, k)
    neighborhood = jax.vmap(lambda c, i: c[i])(coor, idx)         # (B, n_group, k, 3)

    features = encoder_forward(neighborhood, params, tile_bg=tile_bg)   # [Pallas x2]
    return center, features, normal, plane_idx


# ----------------------------------------------------------------------------
# Deterministic parameter init (shapes from Encoder.__init__, embed_dims=128)
# ----------------------------------------------------------------------------
def init_params(key, embed_dims=128):
    ks = jax.random.split(key, 12)

    def w(k, shape, scale):
        return scale * jax.random.normal(k, shape, jnp.float32)

    p = {}
    # Conv1d(3,128,1) stored as (Cin, Cout); coord dim padded 3 -> 8 with zero rows.
    p["w1"] = jnp.pad(w(ks[0], (3, 128), 0.2), ((0, 5), (0, 0)))
    p["b1"] = w(ks[1], (1, 128), 0.1)
    p["g1"] = 1.0 + 0.1 * jax.random.normal(ks[2], (1, 128), jnp.float32)   # BN1 weight
    p["be1"] = w(ks[3], (1, 128), 0.1)                                      # BN1 bias
    p["w2"] = w(ks[4], (128, 256), 0.05)                                    # Conv1d(128,256,1)
    p["b2"] = w(ks[5], (1, 256), 0.1)
    p["w3"] = w(ks[6], (512, 512), 0.03)                                    # Conv1d(512,512,1)
    p["b3"] = w(ks[7], (1, 512), 0.1)
    p["g2"] = 1.0 + 0.1 * jax.random.normal(ks[8], (1, 512), jnp.float32)   # BN2 weight
    p["be2"] = w(ks[9], (1, 512), 0.1)                                      # BN2 bias
    p["w4"] = w(ks[10], (512, embed_dims), 0.03)                            # Conv1d(512,C,1)
    p["b4"] = w(ks[11], (1, embed_dims), 0.1)
    return p


# ----------------------------------------------------------------------------
# Plain-JAX f32 reference of the Encoder (original concat form, two-pass BN var)
# ----------------------------------------------------------------------------
def encoder_reference(neighborhood, params):
    B, G, K, _ = neighborhood.shape
    x = jnp.pad(neighborhood.reshape(B * G * K, 3), ((0, 0), (0, 5)))
    h = x @ params["w1"] + params["b1"]
    mu = h.mean(0, keepdims=True)
    var = ((h - mu) ** 2).mean(0, keepdims=True)
    h = jnp.maximum((h - mu) * lax.rsqrt(var + BN_EPS) * params["g1"] + params["be1"], 0.0)
    f = (h @ params["w2"] + params["b2"]).reshape(B * G, K, -1)
    fg = f.max(axis=1, keepdims=True)
    cat = jnp.concatenate([jnp.broadcast_to(fg, f.shape), f], axis=-1).reshape(B * G * K, -1)
    h2 = cat @ params["w3"] + params["b3"]
    mu2 = h2.mean(0, keepdims=True)
    var2 = ((h2 - mu2) ** 2).mean(0, keepdims=True)
    h2 = jnp.maximum((h2 - mu2) * lax.rsqrt(var2 + BN_EPS) * params["g2"] + params["be2"], 0.0)
    f2 = (h2 @ params["w4"] + params["b4"]).reshape(B * G, K, -1)
    return f2.max(axis=1).reshape(B, G, -1)


if __name__ == "__main__":
    key = jax.random.PRNGKey(0)
    k_pts, k_nrm = jax.random.split(key, 2)

    B, N = 2, 64
    n_group, group_size, embed_dims = 8, 32, 128

    coords = jax.random.uniform(k_pts, (B, N, 3), jnp.float32, -1.0, 1.0)
    normals = jax.random.normal(k_nrm, (B, N, 3), jnp.float32)
    normals = normals / (jnp.linalg.norm(normals, axis=-1, keepdims=True) + 1e-8)
    plane_ids = jnp.broadcast_to(
        (jnp.arange(N, dtype=jnp.float32) % 4.0)[None, :, None], (B, N, 1))
    xyz = jnp.concatenate([coords, normals, plane_ids], axis=-1)   # (B, N, 7)

    params = init_params(jax.random.PRNGKey(42), embed_dims)

    # tile_bg=8 -> 2 row tiles of 256 rows: exercises the gridded/pipelined path
    # (and >= 2 parallel tiles, so both v7x TensorCores would be used).
    center, features, normal, plane_idx = jax.block_until_ready(
        simple_encoder_forward(xyz, n_group, group_size, params, tile_bg=8))

    assert center.shape == (B, 3, n_group)
    assert features.shape == (B, n_group, embed_dims)
    assert normal.shape == (B, 3, n_group)
    assert plane_idx.shape == (B, 1, n_group)
    assert bool(jnp.all(jnp.isfinite(features)))

    # sanity check vs a plain-JAX f32 reference (bf16 MXU operands, bf16 h2
    # storage, fused w2@w3_local -> loose tolerance).
    fps_idx = furthest_point_sample(coords, n_group)
    sampled = jnp.take_along_axis(
        xyz, jnp.broadcast_to(fps_idx[:, :, None], (B, n_group, 7)), axis=1)
    dist = pairwise_sqdist(sampled[:, :, :3], coords)
    _, idx = lax.top_k(-dist, group_size)
    neigh = jax.vmap(lambda c, i: c[i])(coords, idx)
    ref = encoder_reference(neigh, params)
    err = float(jnp.max(jnp.abs(ref - features)))
    assert err < 2e-1, f"encoder mismatch vs reference: {err}"

    print("KERNEL_OK")
</pallas_src>

<mosaic_0001>
module attributes {stable_mosaic.version = 11 : i64} {
  func.func @_sqdist_kernel(%arg0: i32, %arg1: i32, %arg2: memref<1x8x8xf32, #tpu.memory_space<vmem>>, %arg3: memref<1x64x8xf32, #tpu.memory_space<vmem>>, %arg4: memref<1x8x64xf32, #tpu.memory_space<vmem>>) attributes {dimension_semantics = [#tpu.dimension_semantics<parallel>, #tpu.dimension_semantics<arbitrary>], iteration_bounds = array<i64: 2, 1>, scalar_prefetch = 0 : i64, scratch_operands = 0 : i64, tpu.core_type = #tpu.core_type<tc>, window_params = [{transform_indices = @transform_0, window_bounds = array<i64: 1, 8, 8>}, {transform_indices = @transform_1, window_bounds = array<i64: 1, 64, 8>}, {transform_indices = @transform_2, window_bounds = array<i64: 1, 8, 64>}]} {
    %c0 = arith.constant 0 : index
    %c0_0 = arith.constant 0 : index
    %c0_1 = arith.constant 0 : index
    %0 = vector.load %arg2[%c0, %c0_0, %c0_1] : memref<1x8x8xf32, #tpu.memory_space<vmem>>, vector<1x8x8xf32>
    %c0_2 = arith.constant 0 : index
    %c0_3 = arith.constant 0 : index
    %c0_4 = arith.constant 0 : index
    %1 = vector.load %arg3[%c0_2, %c0_3, %c0_4] : memref<1x64x8xf32, #tpu.memory_space<vmem>>, vector<1x64x8xf32>
    %cst = arith.constant dense<0.000000e+00> : vector<1x8x64xf32>
    %2 = tpu.matmul %0, %1, %cst {dimension_numbers = #tpu.dot_dimension_numbers<[2], [2], [1], [1], [0, 0, 0, 1, 1, 1], [0], [0]>} : vector<1x8x8xf32>, vector<1x64x8xf32>, vector<1x8x64xf32> -> vector<1x8x64xf32>
    %c0_5 = arith.constant 0 : index
    %c0_6 = arith.constant 0 : index
    %c0_7 = arith.constant 0 : index
    %3 = vector.load %arg4[%c0_5, %c0_6, %c0_7] : memref<1x8x64xf32, #tpu.memory_space<vmem>>, vector<1x8x64xf32>
    tpu.vector_store %arg4[%c0_5, %c0_6, %c0_7], %2 {strides = array<i32>} : memref<1x8x64xf32, #tpu.memory_space<vmem>>, vector<1x8x64xf32>,
    return
  }
  func.func @transform_0(%arg0: i32, %arg1: i32) -> (i32, i32, i32) {
    %c0_i32 = arith.constant 0 : i32
    %c0_i32_0 = arith.constant 0 : i32
    %c0_i32_1 = arith.constant 0 : i32
    return %arg0, %c0_i32, %c0_i32_0 : i32, i32, i32
  }
  func.func @transform_1(%arg0: i32, %arg1: i32) -> (i32, i32, i32) {
    %c0_i32 = arith.constant 0 : i32
    %c0_i32_0 = arith.constant 0 : i32
    return %arg0, %arg1, %c0_i32 : i32, i32, i32
  }
  func.func @transform_2(%arg0: i32, %arg1: i32) -> (i32, i32, i32) {
    %c0_i32 = arith.constant 0 : i32
    %c0_i32_0 = arith.constant 0 : i32
    return %arg0, %c0_i32, %arg1 : i32, i32, i32
  }
}

</mosaic_0001>

<bundles_post_ra>
// kernel: tpu_custom_call.1
= control target key start
LH: loop header
LB: loop body
LE: loop exit
PB: predicated region body
PF: predicated region fallthrough
CT: control target
= control target key end

     0   :  { %7 = vsyncpa [#allocation3], 0  ;;  %s753_s0 = inlined_call_operand.vmem [shape: f32[2,8,8], index: 0, kind: input, shape index: {}]   ;;  %s754_s1 = inlined_call_operand.vmem [shape: f32[2,64,8], index: 1, kind: input, shape index: {}]   ;;  %s755_s2 = inlined_call_operand.hbm [shape: f32[2,8,64], index: 2, kind: output, shape index: {}]  }
   0x1   :  { %9 = vsyncpa [#allocation3 + $0x1], 0  ;;  %s623_s9 = smov 0   ;;  %s625_s10 = smov 0  }
   0x2   :  { %s627_s11 = smov 0   ;;  %s629_s12 = smov 0  }
   0x3   :  { %s631_s13 = smov 0   ;;  %s633_s14 = smov 0  }
   0x4 LB: > { %s399_s15 = sadd.s32 4294967295, %s602_s14   ;;  %s400_s16 = sadd.s32 4294967294, %s602_s14   ;;  %s602_s14 = sphi %s633_s14, %s15_s14   ;;  %s598_s13 = sphi %s631_s13, %s764_s13   ;;  %s594_s12 = sphi %s629_s12, %s763_s12   ;;  %s590_s11 = sphi %s627_s11, %s762_s11   ;;  %s586_s10 = sphi %s625_s10, %s761_s10   ;;  %s582_s9 = sphi %s623_s9, %s760_s9  }
   0x5   : > { %s27_s17 = sadd.s32 1, %s598_s13  ;;  %s90_s18 = sadd.s32 1, %s590_s11 }
   0x6   : > { %p29_p0 = scmp.ge.s32.totalorder %s27_s17, 2  ;;  %p100_p1 = scmp.ne.s32.totalorder %s590_s11, %s586_s10 }
   0x7   : > { %p101_p2 = scmp.eq.s32.totalorder %s399_s15, 1  ;;  %p106_p3 = scmp.ne.s32.totalorder %s586_s10, %s582_s9 }
   0x8   : > { %s766_s17 = smov (%p29_p0, %s27_s17), 0  ;;  %p107_p5 = scmp.eq.s32.totalorder %s400_s16, 1 }
   0x9   : > { %p663_p4 = por %p101_p2, %p100_p1  ;;  %s85_s20 = ssub.s32 %s598_s13, %s766_s17 }
   0xa   : > { %p403_p6 = scmp.ge.s32.totalorder %s602_s14, 1  ;;  %p88_p7 = scmp.eq.s32.totalorder %s85_s20, 0 }
   0xb   : > { %p670_p8 = por %p107_p5, %p106_p3  ;;  %p145_p9 = scmp.lt.s32.totalorder %s602_s14, 3 }
   0xc   : > { %s676_s22 = scalar_select %p88_p7, %s590_s11, %s90_s18  }
   0xd   : > { %p146_p10 = pnand %p403_p6, %p145_p9 }
   0xe   : > { %p175_p11 = scmp.lt.s32.totalorder (!%p146_p10), %s594_s12, 1  ;;  %v604_v0 = vmov (!%p146_p10), 0.0|0.0   ;;  %vm605_vm0 = vmmov (!%p146_p10), 0   ;;  %v606_v1 = vmov (!%p146_p10), 0.0   ;;  %vm198_vm1 = vcmask (!%p146_p10), 64512   ;;  %s172_s4 = sand.u32 (!%p146_p10), 1, %s586_s10  }
   0xf   : > { %149 = sbr.rel (%p146_p10) target bundleno = 286 (0x11e), region = 28  ;;  %450 = vmatprep.subr.bf16.mxu0 (!%p146_p10), %v604_v0  ;;  %447 = vmatprep.mubr.msk.f32.mxu0 (!%p146_p10), %vm605_vm0, %v606_v1  ;;  %vm685_vm2 = vmpackc.low (!%p146_p10), %vm198_vm1, %vm198_vm1  ;;  %s404_s5 = sshll.u32 (!%p146_p10), %s172_s4, 3  ;;  %vm296_vm3 = vcmask (!%p146_p10), 523264  }
  0x10   : > { %s418_s6 = sshll.u32 (!%p146_p10), %s594_s12, 7  ;;  %s174_s7 = scalar_lea.vmem (!%p146_p10), [#allocation2], %s404_s5 }
  0x11   : > { %s313_s8 = sshll.u32 (!%p146_p10), %s174_s7, 4  ;;  %s706_s18 = scalar_lea.hbm (!%p146_p10), %s755_s2, %s418_s6  ;;  %s708_s8 = int_to_ptr.vmem [resolvable:$true] %s313_s8 }
  0x12   : > { %s299_s20 = scalar_lea.sflag (!%p146_p10), [#allocation3], %s172_s4 }
  0x16   : > { %s176_s23 = scalar_select %p175_p11, %s594_s12, 1 }
  0x17   : > { %s607_s12 = smov [#allocation2]  }
  0x18   : > { %s421_s24 = sshll.u32 %s176_s23, 6  ;;  %s405_s28 = sshll.u32 %s176_s23, 3 }
  0x19   : > { %s187_s27 = scalar_lea.vmem %s754_s1, %s421_s24  ;;  %s178_s3 = scalar_lea.vmem %s753_s0, %s405_s28 }
  0x1a   : > { %v190_v2 = vld [vmem:[%s187_s27] sm:$0xff]  ;;  %v191_v3 = vld [vmem:[%s187_s27 + $0x8] sm:$0xff]  ;;  %v192_v6 = vld [vmem:[%s187_s27 + $0x10] sm:$0xff]  ;;  %s524_s23 = scalar_lea.vmem %s708_s8, 128  ;;  %s528_s24 = sshll.u32 %s607_s12, 4  ;;  %s529_s24 = int_to_ptr.vmem [resolvable:$false] %s528_s24 }
  0x1b   : > { %v451_v5 = vpack.c.bf16 %v191_v3, %v190_v2  ;;  %v193_v7 = vld [vmem:[%s187_s27 + $0x18] sm:$0xff]  ;;  %v194_v9 = vld [vmem:[%s187_s27 + $0x20] sm:$0xff]  ;;  %v195_v10 = vld [vmem:[%s187_s27 + $0x28] sm:$0xff]  ;;  %p525_p12 = scmp.ne.s32.totalorder %s708_s8, %s524_s23  ;;  %s530_s25 = scalar_lea.vmem %s529_s24, 256 }
  0x1c   : > { %v455_v8 = vpack.c.bf16 %v193_v7, %v192_v6  ;;  %v459_v11 = vpack.c.bf16 %v195_v10, %v194_v9  ;;  %v196_v12 = vld [vmem:[%s187_s27 + $0x30] sm:$0xff]  ;;  %v197_v13 = vld [vmem:[%s187_s27 + $0x38] sm:$0xff]  ;;  %v189_v15 = vld [vmem:[%s178_s3] sm:$0xff]  ;;  %p531_p1 = scmp.lt.s32.totalorder %s708_s8, %s529_s24  ;;  %p532_p2 = scmp.lt.s32.totalorder %s530_s25, %s524_s23 }
  0x1d   : > { %453 = vmatpush3.bf16.xpose.msk.msra.mxu0 %vm685_vm2, %v451_v5  ;;  %v463_v14 = vpack.c.bf16 %v197_v13, %v196_v12  ;;  %p526_p13 = pnand %p525_p12, %p663_p4 }
  0x1e   : > { %454 = vmatprep.subr.bf16.mxu0 %v604_v0  ;;  %p533_p3 = por %p532_p2, %p531_p1 }
  0x1f   : > { %p527_p0 = pneg %p526_p13 }
  0x21   : > { %p534_p5 = pnand %p533_p3, %p527_p0 }
  0x25   : > { %457 = vmatpush3.bf16.xpose.msk.msra.mxu0 %vm685_vm2, %v455_v8 }
  0x26   : > { %458 = vmatprep.subr.bf16.mxu0 %v604_v0 }
  0x2d   : > { %461 = vmatpush3.bf16.xpose.msk.msra.mxu0 %vm685_vm2, %v459_v11 }
  0x2e   : > { %462 = vmatprep.subr.bf16.mxu0 %v604_v0 }
  0x35   : > { %465 = vmatpush3.bf16.xpose.msk.msra.mxu0 %vm685_vm2, %v463_v14 }
  0x3c   : > { %448 = vmatmul.mubr.msk.f32.vlgmr.msra.gmra.mrb[0].mxu0 %vm198_vm1, %v189_v15 }
 0x10f   : > { %v292_v16 = vpop.f32.mrb[0].mxu0 }
 0x110   : > { %297 = vst.msk [vmem:[%s174_s7] sm:$0xff] %vm296_vm3, %v292_v16  ;;  %v449_v17 = vpop.f32.mrb[1].mxu0 }
 0x111   : > { %537 = shalt.err (!%p534_p5)
}
 0x112   : > { %s538_s26 = scalar_lea.hbm %s706_s18, 128  ;;  %s542_s29 = scalar_lea.hbm %s755_s2, 256 }
 0x113   : > { %p539_p6 = scmp.ne.s32.totalorder %s706_s18, %s538_s26  ;;  %p543_p10 = scmp.lt.u32.totalorder %s706_s18, %s755_s2 }
 0x114   : > { %p544_p11 = scmp.lt.u32.totalorder %s542_s29, %s538_s26  ;;  %p546_p13 = scmp.lt.u32.totalorder %s538_s26, %s706_s18 }
 0x115   : > { %p540_p7 = pnand %p539_p6, %p663_p4 }
 0x116   : > { %p545_p12 = por %p544_p11, %p543_p10 }
 0x117   : > { %p541_p9 = pneg %p540_p7 }
 0x118   : > { %p547_p0 = por %p546_p13, %p545_p12 }
 0x11a   : > { %p548_p1 = pnand %p547_p0, %p541_p9 }
 0x11c   : > { %551 = shalt.err (!%p548_p1)
}
 0x11d   : > { %466 = dma.vmem_to_hbm [thread:$0]  (%p663_p4), %s708_s8, 128, %s706_s18, %s299_s20  }
 0x11e PF: > { %p472_p2 = scmp.ge.s32.totalorder %s602_s14, 2  ;;  %s325_s4 = sand.u32 1, %s582_s9  }
 0x11f   : > { %s326_s5 = scalar_lea.sflag [#allocation3], %s325_s4 }
 0x120   : > { %p469_p3 = pnand %p472_p2, %p670_p8 }
 0x122   : > { %577 = dma.done.wait (!%p469_p3), %s326_s5, 128  }
 0x123   : > { %579 = vsyncadd (!%p469_p3), %s326_s5, 4294967168  ;;  %s15_s14 = sadd.s32 1, %s602_s14   ;;  %s760_s9 = smov %s586_s10 }
 0x124   : > { %p12_p5 = scmp.ge.s32.totalorder %s15_s14, 4   ;;  %s761_s10 = smov %s590_s11 }
 0x125   : > { %s762_s11 = smov %s676_s22  ;;  %s763_s12 = smov %s598_s13 }
 0x126   : > { %s764_s13 = smov %s766_s17  ;;  %14 = sbr.rel (!%p12_p5) target bundleno = 4 (0x4), region = 66 }
 0x12d   :  { %331 = vsyncpa [#allocation3], 1 }
 0x12e   :  { %333 = vsyncpa [#allocation3 + $0x1], 1 }

</bundles_post_ra>
